<compile_context>
chip_gen: v6e
topology: v6e:2x2x1
jax: 0.10.0
libtpu: 0.0.40
codegen_flags: <defaults>
</compile_context>

<pallas_src>
import functools

import jax
import jax.numpy as jnp
from jax.experimental import pallas as pl
from jax.experimental.pallas import tpu as pltpu


# ----------------------------------------------------------------------------
# Fused kernel: attention-aggregated depthwise conv + 1x1 pointwise conv+bias.
# Grid = (batch, output-row strips).  The padded image block is indexed by
# batch only, so it stays resident in VMEM across the row-strip axis.
# ----------------------------------------------------------------------------
def _fused_dyn_conv_kernel(x_ref, agg_ref, w1_ref, b1_ref, o_ref, *,
                           TH, Wo, C, O, ks, stride, dilation):
    # x_ref:   (1, C, Hp, Wp)   zero-padded input for this batch element (NCHW)
    # agg_ref: (1, ks*ks, C)    attention-aggregated depthwise weights, tap-major
    # w1_ref:  (O, C)           conv_1 1x1 weights
    # b1_ref:  (O, 1)           conv_1 bias
    # o_ref:   (1, O, TH*Wo)    lane-dense flat output row strip (row-major HW)
    r = pl.program_id(1)
    row0 = pl.multiple_of(r * (TH * stride), TH * stride)

    # Per-tap, per-channel dynamic weights: read directly from the ref and
    # hoisted once before the tap loops (tiny; ks*ks reads per grid step).
    w_taps = [agg_ref[0, t, :].reshape(C, 1, 1) for t in range(ks * ks)]

    # 9-tap depthwise accumulate with spatial (W) in lanes; f32 accumulation
    # (upcast per tap so a bf16 storage path stays v5e-safe).
    acc = jnp.zeros((C, TH, Wo), jnp.float32)
    for dy in range(ks):
        h0 = row0 + dy * dilation
        for dx in range(ks):
            w0 = dx * dilation
            if stride == 1:
                patch = x_ref[0, :, pl.ds(h0, TH), w0:w0 + Wo]
            else:
                patch = x_ref[0, :, pl.ds(h0, TH, stride), pl.ds(w0, Wo, stride)]
            acc = acc + patch.astype(jnp.float32) * w_taps[dy * ks + dx]

    # Fused 1x1 pointwise conv (conv_1) + bias.  (O,C)@(C,TH*Wo) keeps the big
    # dimension in lanes, the depthwise result never leaves VMEM, and the
    # stored block is lane-dense regardless of O / Wo.
    acc2 = acc.reshape(C, TH * Wo).astype(w1_ref.dtype)
    out = jnp.dot(w1_ref[...], acc2, preferred_element_type=jnp.float32)
    out = out + b1_ref[...]
    o_ref[0] = out.astype(o_ref.dtype)


def _vmem_cap_bytes():
    # Physical VMEM of the running generation; clamp scoped-VMEM requests to it
    # (v7x only has 64 MiB -- never request more than exists).
    try:
        return int(pltpu.get_tpu_info().vmem_capacity_bytes)
    except Exception:
        return 64 * 1024 * 1024


def _pick_row_tile(Ho, Wo, C, O, B, itemsize, budget=2 * 1024 * 1024):
    """Largest output-row strip whose live data stays comfortably VMEM resident.

    Requires (TH * Wo) % 128 == 0 so the flat output block is lane-aligned
    (unmasked stores); if no such divisor of Ho exists, falls back to a single
    full-height strip (block == full array extent, always legal).  When B == 1
    it keeps >= 2 grid steps so both v7x TensorCores get work.
    """
    per_row = 4 * Wo * (C + 2 * O) + itemsize * Wo * C
    cap = max(1, min(Ho, 64, budget // max(1, per_row)))
    if B == 1 and Ho > 1:
        cap = min(cap, max(1, Ho // 2))
    for t in range(cap, 0, -1):
        if Ho % t == 0 and (t * Wo) % 128 == 0:
            return t
    return Ho


# ----------------------------------------------------------------------------
# Wrapper: attention + weight aggregation in plain JAX (tiny per-batch matmuls),
# fused Pallas conv for everything image-sized.
# ----------------------------------------------------------------------------
def dynamic_conv2d_forward(x_nchw, params, *, kernel_size, stride=1, padding=0,
                           dilation=1, temperature=30, storage_dtype=None):
    B, C, H, W = x_nchw.shape
    ks = kernel_size
    w_fc1 = params["fc1_weight"]      # (hidden, C, 1, 1)
    w_fc2 = params["fc2_weight"]      # (K, hidden, 1, 1)
    w_dyn = params["dyn_weight"]      # (K, C, 1, ks, ks)   (groups == in_planes)
    w1 = params["conv1_weight"]       # (O, C, 1, 1)
    b1 = params["conv1_bias"]         # (O,)
    hidden = w_fc1.shape[0]
    K = w_dyn.shape[0]
    O = w1.shape[0]
    if storage_dtype is None:
        storage_dtype = x_nchw.dtype  # pass jnp.bfloat16 to halve HBM/VMEM traffic
    out_dtype = x_nchw.dtype

    xf = x_nchw.astype(jnp.float32)

    # --- attention2d (avgpool -> fc1 -> relu -> fc2 -> softmax) and the
    # attention-weighted kernel aggregation: tiny (B,C)/(B,K) matmuls, once per
    # batch, in plain JAX.  (self.bn / self.finall / self.rl are not used in
    # the PyTorch forward.) ---------------------------------------------------
    pooled = jnp.mean(xf, axis=(2, 3))                                    # (B, C)
    h = jnp.maximum(pooled @ w_fc1.reshape(hidden, C).T, 0.0)             # (B, hidden)
    logits = h @ w_fc2.reshape(K, hidden).T                               # (B, K)
    attn = jax.nn.softmax(logits / float(temperature), axis=-1)           # (B, K)
    # PyTorch flattens (K, C, 1, ks, ks) channel-major; relayout to tap-major.
    agg = (attn @ w_dyn.reshape(K, C * ks * ks)).reshape(B, C, ks, ks)
    agg = jnp.transpose(agg, (0, 2, 3, 1)).reshape(B, ks * ks, C)         # (B, ks*ks, C)

    # NCHW is kept end to end (no NCHW<->NHWC transposes; the output of the
    # kernel is already NCHW).  Only the spatial zero-pad remains in the wrapper.
    # TODO(synk): fold the zero padding into the kernel (masked border taps /
    # per-strip halo DMA) to remove this one full-image HBM pass and to allow
    # row-strip input tiling for feature maps that do not fit VMEM (v7x: 64 MiB).
    xpad = jnp.pad(xf, ((0, 0), (0, 0), (padding, padding), (padding, padding)))
    xpad = xpad.astype(storage_dtype)
    Hp, Wp = H + 2 * padding, W + 2 * padding
    Ho = (Hp - dilation * (ks - 1) - 1) // stride + 1
    Wo = (Wp - dilation * (ks - 1) - 1) // stride + 1

    w1_2d = w1.reshape(O, C).astype(storage_dtype)        # (O, C): no transpose needed
    b1_2d = b1.reshape(O, 1).astype(jnp.float32)

    itemsize = jnp.dtype(storage_dtype).itemsize
    TH = _pick_row_tile(Ho, Wo, C, O, B, itemsize)
    n_rt = Ho // TH

    flops = 2 * B * Ho * Wo * C * (ks * ks + O)
    bytes_accessed = (itemsize * B * C * Hp * Wp
                      + 4 * (B * ks * ks * C + O * C + O)
                      + jnp.dtype(out_dtype).itemsize * B * O * Ho * Wo)

    cp_kwargs = dict(dimension_semantics=("parallel", "parallel"))
    # Padded image resident (double-buffered) per batch + per-strip output/acc.
    # Raise the scoped-VMEM ceiling only when needed and never above ~7/8 of the
    # physical VMEM of the current generation.
    vmem_est = (2 * itemsize * C * Hp * Wp
                + 4 * (2 * O * TH * Wo + C * TH * Wo)
                + 2 * (4 * ks * ks * C + itemsize * O * C + 4 * O))
    if vmem_est > 24 * 1024 * 1024:
        cp_kwargs["vmem_limit_bytes"] = min(int(vmem_est * 5 // 4),
                                            (_vmem_cap_bytes() * 7) // 8)

    out_flat = pl.pallas_call(
        functools.partial(_fused_dyn_conv_kernel, TH=TH, Wo=Wo, C=C, O=O,
                          ks=ks, stride=stride, dilation=dilation),
        out_shape=jax.ShapeDtypeStruct((B, O, Ho * Wo), out_dtype),
        grid=(B, n_rt),
        in_specs=[
            pl.BlockSpec((1, C, Hp, Wp), lambda b, r: (b, 0, 0, 0)),
            pl.BlockSpec((1, ks * ks, C), lambda b, r: (b, 0, 0)),
            pl.BlockSpec((O, C), lambda b, r: (0, 0)),
            pl.BlockSpec((O, 1), lambda b, r: (0, 0)),
        ],
        out_specs=pl.BlockSpec((1, O, TH * Wo), lambda b, r: (b, 0, r)),
        compiler_params=pltpu.CompilerParams(**cp_kwargs),
        cost_estimate=pl.CostEstimate(flops=flops, transcendentals=0,
                                      bytes_accessed=bytes_accessed),
    )(xpad, agg, w1_2d, b1_2d)

    # Collapsed-HW -> (Ho, Wo) is a contiguous reshape (free); already NCHW.
    return out_flat.reshape(B, O, Ho, Wo)


# ----------------------------------------------------------------------------
# Pure-JAX reference (mirrors the PyTorch forward exactly) for verification.
# Note: self.bn / self.finall / self.rl are defined but NOT used in forward.
# ----------------------------------------------------------------------------
def reference_forward(x, params, *, kernel_size, stride=1, padding=0,
                      dilation=1, temperature=30):
    B, C, H, W = x.shape
    ks = kernel_size
    w_fc1 = params["fc1_weight"]
    w_fc2 = params["fc2_weight"]
    w_dyn = params["dyn_weight"]
    w1 = params["conv1_weight"]
    b1 = params["conv1_bias"]
    hidden = w_fc1.shape[0]
    K = w_dyn.shape[0]
    O = w1.shape[0]

    pooled = jnp.mean(x, axis=(2, 3))                               # (B, C)
    h = jnp.maximum(pooled @ w_fc1.reshape(hidden, C).T, 0.0)       # (B, hidden)
    logits = h @ w_fc2.reshape(K, hidden).T                          # (B, K)
    attn = jax.nn.softmax(logits / temperature, axis=1)

    agg = (attn @ w_dyn.reshape(K, -1)).reshape(B * C, 1, ks, ks)
    xg = x.reshape(1, B * C, H, W)
    dw = jax.lax.conv_general_dilated(
        xg, agg, window_strides=(stride, stride),
        padding=((padding, padding), (padding, padding)),
        rhs_dilation=(dilation, dilation),
        dimension_numbers=("NCHW", "OIHW", "NCHW"),
        feature_group_count=B * C)
    dw = dw.reshape(B, C, dw.shape[-2], dw.shape[-1])
    out = jnp.einsum("bchw,oc->bohw", dw, w1.reshape(O, C)) + b1[None, :, None, None]
    return out


if __name__ == "__main__":
    key = jax.random.PRNGKey(0)
    B, C, H, W = 2, 4, 16, 16          # in_planes = 4
    O, ks, K, ratio, temperature = 8, 3, 4, 0.25, 30
    stride, padding, dilation = 1, 1, 1
    hidden = int(C * ratio) + 1        # in_planes != 3 branch of attention2d

    k1, k2, k3, k4, k5, k6 = jax.random.split(key, 6)
    x = jax.random.normal(k1, (B, C, H, W), jnp.float32)
    params = {
        "fc1_weight": jax.random.normal(k2, (hidden, C, 1, 1), jnp.float32) * (2.0 / C) ** 0.5,
        "fc2_weight": jax.random.normal(k3, (K, hidden, 1, 1), jnp.float32) * (2.0 / hidden) ** 0.5,
        "dyn_weight": jax.random.normal(k4, (K, C, 1, ks, ks), jnp.float32) * (2.0 / (C * ks * ks)) ** 0.5,
        "conv1_weight": jax.random.normal(k5, (O, C, 1, 1), jnp.float32) * (1.0 / C) ** 0.5,
        "conv1_bias": jax.random.normal(k6, (O,), jnp.float32) * 0.1,
    }

    out = dynamic_conv2d_forward(x, params, kernel_size=ks, stride=stride,
                                 padding=padding, dilation=dilation,
                                 temperature=temperature)
    out = jax.block_until_ready(out)

    ref = reference_forward(x, params, kernel_size=ks, stride=stride,
                            padding=padding, dilation=dilation,
                            temperature=temperature)
    assert out.shape == (B, O, H, W), out.shape
    max_err = float(jnp.max(jnp.abs(out - ref)))
    assert jnp.allclose(out, ref, atol=1e-4, rtol=1e-4), max_err
    print("KERNEL_OK")
</pallas_src>

<mosaic_0001>
module attributes {stable_mosaic.version = 11 : i64} {
  func.func @_fused_dyn_conv_kernel(%arg0: i32, %arg1: i32, %arg2: memref<1x4x18x18xf32, #tpu.memory_space<vmem>>, %arg3: memref<1x9x4xf32, #tpu.memory_space<vmem>>, %arg4: memref<8x4xf32, #tpu.memory_space<vmem>>, %arg5: memref<8x1xf32, #tpu.memory_space<vmem>>, %arg6: memref<1x8x256xf32, #tpu.memory_space<vmem>>) attributes {dimension_semantics = [#tpu.dimension_semantics<parallel>, #tpu.dimension_semantics<parallel>], iteration_bounds = array<i64: 2, 1>, scalar_prefetch = 0 : i64, scratch_operands = 0 : i64, tpu.core_type = #tpu.core_type<tc>, window_params = [{transform_indices = @transform_0, window_bounds = array<i64: 1, 4, 18, 18>}, {transform_indices = @transform_1, window_bounds = array<i64: 1, 9, 4>}, {pipeline_mode = #tpu.pipeline_mode<synchronous>, transform_indices = @transform_2, window_bounds = array<i64: 8, 4>}, {pipeline_mode = #tpu.pipeline_mode<synchronous>, transform_indices = @transform_3, window_bounds = array<i64: 8, 1>}, {transform_indices = @transform_4, window_bounds = array<i64: 1, 8, 256>}]} {
    %c16_i32 = arith.constant 16 : i32
    %0 = arith.muli %arg1, %c16_i32 : i32
    %1 = tpu.assume_multiple %0, 16 : i32
    %c0 = arith.constant 0 : index
    %c0_0 = arith.constant 0 : index
    %c0_1 = arith.constant 0 : index
    %2 = vector.load %arg3[%c0, %c0_0, %c0_1] : memref<1x9x4xf32, #tpu.memory_space<vmem>>, vector<1x1x4xf32>
    %3 = vector.shape_cast %2 : vector<1x1x4xf32> to vector<4xf32>
    %4 = vector.shape_cast %3 : vector<4xf32> to vector<4x1x1xf32>
    %c0_2 = arith.constant 0 : index
    %c1 = arith.constant 1 : index
    %c0_3 = arith.constant 0 : index
    %5 = vector.load %arg3[%c0_2, %c1, %c0_3] : memref<1x9x4xf32, #tpu.memory_space<vmem>>, vector<1x1x4xf32>
    %6 = vector.shape_cast %5 : vector<1x1x4xf32> to vector<4xf32>
    %7 = vector.shape_cast %6 : vector<4xf32> to vector<4x1x1xf32>
    %c0_4 = arith.constant 0 : index
    %c2 = arith.constant 2 : index
    %c0_5 = arith.constant 0 : index
    %8 = vector.load %arg3[%c0_4, %c2, %c0_5] : memref<1x9x4xf32, #tpu.memory_space<vmem>>, vector<1x1x4xf32>
    %9 = vector.shape_cast %8 : vector<1x1x4xf32> to vector<4xf32>
    %10 = vector.shape_cast %9 : vector<4xf32> to vector<4x1x1xf32>
    %c0_6 = arith.constant 0 : index
    %c3 = arith.constant 3 : index
    %c0_7 = arith.constant 0 : index
    %11 = vector.load %arg3[%c0_6, %c3, %c0_7] : memref<1x9x4xf32, #tpu.memory_space<vmem>>, vector<1x1x4xf32>
    %12 = vector.shape_cast %11 : vector<1x1x4xf32> to vector<4xf32>
    %13 = vector.shape_cast %12 : vector<4xf32> to vector<4x1x1xf32>
    %c0_8 = arith.constant 0 : index
    %c4 = arith.constant 4 : index
    %c0_9 = arith.constant 0 : index
    %14 = vector.load %arg3[%c0_8, %c4, %c0_9] : memref<1x9x4xf32, #tpu.memory_space<vmem>>, vector<1x1x4xf32>
    %15 = vector.shape_cast %14 : vector<1x1x4xf32> to vector<4xf32>
    %16 = vector.shape_cast %15 : vector<4xf32> to vector<4x1x1xf32>
    %c0_10 = arith.constant 0 : index
    %c5 = arith.constant 5 : index
    %c0_11 = arith.constant 0 : index
    %17 = vector.load %arg3[%c0_10, %c5, %c0_11] : memref<1x9x4xf32, #tpu.memory_space<vmem>>, vector<1x1x4xf32>
    %18 = vector.shape_cast %17 : vector<1x1x4xf32> to vector<4xf32>
    %19 = vector.shape_cast %18 : vector<4xf32> to vector<4x1x1xf32>
    %c0_12 = arith.constant 0 : index
    %c6 = arith.constant 6 : index
    %c0_13 = arith.constant 0 : index
    %20 = vector.load %arg3[%c0_12, %c6, %c0_13] : memref<1x9x4xf32, #tpu.memory_space<vmem>>, vector<1x1x4xf32>
    %21 = vector.shape_cast %20 : vector<1x1x4xf32> to vector<4xf32>
    %22 = vector.shape_cast %21 : vector<4xf32> to vector<4x1x1xf32>
    %c0_14 = arith.constant 0 : index
    %c7 = arith.constant 7 : index
    %c0_15 = arith.constant 0 : index
    %23 = vector.load %arg3[%c0_14, %c7, %c0_15] : memref<1x9x4xf32, #tpu.memory_space<vmem>>, vector<1x1x4xf32>
    %24 = vector.shape_cast %23 : vector<1x1x4xf32> to vector<4xf32>
    %25 = vector.shape_cast %24 : vector<4xf32> to vector<4x1x1xf32>
    %c0_16 = arith.constant 0 : index
    %c8 = arith.constant 8 : index
    %c0_17 = arith.constant 0 : index
    %26 = vector.load %arg3[%c0_16, %c8, %c0_17] : memref<1x9x4xf32, #tpu.memory_space<vmem>>, vector<1x1x4xf32>
    %27 = vector.shape_cast %26 : vector<1x1x4xf32> to vector<4xf32>
    %28 = vector.shape_cast %27 : vector<4xf32> to vector<4x1x1xf32>
    %cst = arith.constant 0.000000e+00 : f32
    %29 = vector.broadcast %cst : f32 to vector<4x16x16xf32>
    %c0_i32 = arith.constant 0 : i32
    %30 = arith.addi %1, %c0_i32 : i32
    %c0_18 = arith.constant 0 : index
    %c0_19 = arith.constant 0 : index
    %31 = arith.index_cast %30 : i32 to index
    %c0_20 = arith.constant 0 : index
    %32 = vector.load %arg2[%c0_18, %c0_19, %31, %c0_20] : memref<1x4x18x18xf32, #tpu.memory_space<vmem>>, vector<1x4x16x16xf32>
    %33 = vector.shape_cast %32 : vector<1x4x16x16xf32> to vector<4x16x16xf32>
    %34 = vector.broadcast %4 : vector<4x1x1xf32> to vector<4x16x16xf32>
    %35 = arith.mulf %33, %34 : vector<4x16x16xf32>
    %36 = arith.addf %29, %35 : vector<4x16x16xf32>
    %c0_21 = arith.constant 0 : index
    %c0_22 = arith.constant 0 : index
    %37 = arith.index_cast %30 : i32 to index
    %c1_23 = arith.constant 1 : index
    %38 = vector.load %arg2[%c0_21, %c0_22, %37, %c1_23] : memref<1x4x18x18xf32, #tpu.memory_space<vmem>>, vector<1x4x16x16xf32>
    %39 = vector.shape_cast %38 : vector<1x4x16x16xf32> to vector<4x16x16xf32>
    %40 = vector.broadcast %7 : vector<4x1x1xf32> to vector<4x16x16xf32>
    %41 = arith.mulf %39, %40 : vector<4x16x16xf32>
    %42 = arith.addf %36, %41 : vector<4x16x16xf32>
    %c0_24 = arith.constant 0 : index
    %c0_25 = arith.constant 0 : index
    %43 = arith.index_cast %30 : i32 to index
    %c2_26 = arith.constant 2 : index
    %44 = vector.load %arg2[%c0_24, %c0_25, %43, %c2_26] : memref<1x4x18x18xf32, #tpu.memory_space<vmem>>, vector<1x4x16x16xf32>
    %45 = vector.shape_cast %44 : vector<1x4x16x16xf32> to vector<4x16x16xf32>
    %46 = vector.broadcast %10 : vector<4x1x1xf32> to vector<4x16x16xf32>
    %47 = arith.mulf %45, %46 : vector<4x16x16xf32>
    %48 = arith.addf %42, %47 : vector<4x16x16xf32>
    %c1_i32 = arith.constant 1 : i32
    %49 = arith.addi %1, %c1_i32 : i32
    %c0_27 = arith.constant 0 : index
    %c0_28 = arith.constant 0 : index
    %50 = arith.index_cast %49 : i32 to index
    %c0_29 = arith.constant 0 : index
    %51 = vector.load %arg2[%c0_27, %c0_28, %50, %c0_29] : memref<1x4x18x18xf32, #tpu.memory_space<vmem>>, vector<1x4x16x16xf32>
    %52 = vector.shape_cast %51 : vector<1x4x16x16xf32> to vector<4x16x16xf32>
    %53 = vector.broadcast %13 : vector<4x1x1xf32> to vector<4x16x16xf32>
    %54 = arith.mulf %52, %53 : vector<4x16x16xf32>
    %55 = arith.addf %48, %54 : vector<4x16x16xf32>
    %c0_30 = arith.constant 0 : index
    %c0_31 = arith.constant 0 : index
    %56 = arith.index_cast %49 : i32 to index
    %c1_32 = arith.constant 1 : index
    %57 = vector.load %arg2[%c0_30, %c0_31, %56, %c1_32] : memref<1x4x18x18xf32, #tpu.memory_space<vmem>>, vector<1x4x16x16xf32>
    %58 = vector.shape_cast %57 : vector<1x4x16x16xf32> to vector<4x16x16xf32>
    %59 = vector.broadcast %16 : vector<4x1x1xf32> to vector<4x16x16xf32>
    %60 = arith.mulf %58, %59 : vector<4x16x16xf32>
    %61 = arith.addf %55, %60 : vector<4x16x16xf32>
    %c0_33 = arith.constant 0 : index
    %c0_34 = arith.constant 0 : index
    %62 = arith.index_cast %49 : i32 to index
    %c2_35 = arith.constant 2 : index
    %63 = vector.load %arg2[%c0_33, %c0_34, %62, %c2_35] : memref<1x4x18x18xf32, #tpu.memory_space<vmem>>, vector<1x4x16x16xf32>
    %64 = vector.shape_cast %63 : vector<1x4x16x16xf32> to vector<4x16x16xf32>
    %65 = vector.broadcast %19 : vector<4x1x1xf32> to vector<4x16x16xf32>
    %66 = arith.mulf %64, %65 : vector<4x16x16xf32>
    %67 = arith.addf %61, %66 : vector<4x16x16xf32>
    %c2_i32 = arith.constant 2 : i32
    %68 = arith.addi %1, %c2_i32 : i32
    %c0_36 = arith.constant 0 : index
    %c0_37 = arith.constant 0 : index
    %69 = arith.index_cast %68 : i32 to index
    %c0_38 = arith.constant 0 : index
    %70 = vector.load %arg2[%c0_36, %c0_37, %69, %c0_38] : memref<1x4x18x18xf32, #tpu.memory_space<vmem>>, vector<1x4x16x16xf32>
    %71 = vector.shape_cast %70 : vector<1x4x16x16xf32> to vector<4x16x16xf32>
    %72 = vector.broadcast %22 : vector<4x1x1xf32> to vector<4x16x16xf32>
    %73 = arith.mulf %71, %72 : vector<4x16x16xf32>
    %74 = arith.addf %67, %73 : vector<4x16x16xf32>
    %c0_39 = arith.constant 0 : index
    %c0_40 = arith.constant 0 : index
    %75 = arith.index_cast %68 : i32 to index
    %c1_41 = arith.constant 1 : index
    %76 = vector.load %arg2[%c0_39, %c0_40, %75, %c1_41] : memref<1x4x18x18xf32, #tpu.memory_space<vmem>>, vector<1x4x16x16xf32>
    %77 = vector.shape_cast %76 : vector<1x4x16x16xf32> to vector<4x16x16xf32>
    %78 = vector.broadcast %25 : vector<4x1x1xf32> to vector<4x16x16xf32>
    %79 = arith.mulf %77, %78 : vector<4x16x16xf32>
    %80 = arith.addf %74, %79 : vector<4x16x16xf32>
    %c0_42 = arith.constant 0 : index
    %c0_43 = arith.constant 0 : index
    %81 = arith.index_cast %68 : i32 to index
    %c2_44 = arith.constant 2 : index
    %82 = vector.load %arg2[%c0_42, %c0_43, %81, %c2_44] : memref<1x4x18x18xf32, #tpu.memory_space<vmem>>, vector<1x4x16x16xf32>
    %83 = vector.shape_cast %82 : vector<1x4x16x16xf32> to vector<4x16x16xf32>
    %84 = vector.broadcast %28 : vector<4x1x1xf32> to vector<4x16x16xf32>
    %85 = arith.mulf %83, %84 : vector<4x16x16xf32>
    %86 = arith.addf %80, %85 : vector<4x16x16xf32>
    %87 = vector.shape_cast %86 : vector<4x16x16xf32> to vector<4x256xf32>
    %c0_45 = arith.constant 0 : index
    %c0_46 = arith.constant 0 : index
    %88 = vector.load %arg4[%c0_45, %c0_46] : memref<8x4xf32, #tpu.memory_space<vmem>>, vector<8x4xf32>
    %cst_47 = arith.constant dense<0.000000e+00> : vector<8x256xf32>
    %89 = tpu.matmul %88, %87, %cst_47 {dimension_numbers = #tpu.dot_dimension_numbers<[1], [0], [0], [1], [0, 0, 1, 1], [], []>} : vector<8x4xf32>, vector<4x256xf32>, vector<8x256xf32> -> vector<8x256xf32>
    %c0_48 = arith.constant 0 : index
    %c0_49 = arith.constant 0 : index
    %90 = vector.load %arg5[%c0_48, %c0_49] : memref<8x1xf32, #tpu.memory_space<vmem>>, vector<8x1xf32>
    %91 = vector.broadcast %90 : vector<8x1xf32> to vector<8x256xf32>
    %92 = arith.addf %89, %91 : vector<8x256xf32>
    %c0_50 = arith.constant 0 : index
    %c0_51 = arith.constant 0 : index
    %c0_52 = arith.constant 0 : index
    %93 = vector.load %arg6[%c0_50, %c0_51, %c0_52] : memref<1x8x256xf32, #tpu.memory_space<vmem>>, vector<1x8x256xf32>
    %94 = vector.shape_cast %93 : vector<1x8x256xf32> to vector<8x256xf32>
    %95 = vector.shape_cast %92 : vector<8x256xf32> to vector<1x8x256xf32>
    tpu.vector_store %arg6[%c0_50, %c0_51, %c0_52], %95 {strides = array<i32>} : memref<1x8x256xf32, #tpu.memory_space<vmem>>, vector<1x8x256xf32>,
    return
  }
  func.func @transform_0(%arg0: i32, %arg1: i32) -> (i32, i32, i32, i32) {
    %c0_i32 = arith.constant 0 : i32
    %c0_i32_0 = arith.constant 0 : i32
    %c0_i32_1 = arith.constant 0 : i32
    %c0_i32_2 = arith.constant 0 : i32
    return %arg0, %c0_i32, %c0_i32_0, %c0_i32_1 : i32, i32, i32, i32
  }
  func.func @transform_1(%arg0: i32, %arg1: i32) -> (i32, i32, i32) {
    %c0_i32 = arith.constant 0 : i32
    %c0_i32_0 = arith.constant 0 : i32
    %c0_i32_1 = arith.constant 0 : i32
    return %arg0, %c0_i32, %c0_i32_0 : i32, i32, i32
  }
  func.func @transform_2(%arg0: i32, %arg1: i32) -> (i32, i32) {
    %c0_i32 = arith.constant 0 : i32
    %c0_i32_0 = arith.constant 0 : i32
    %c0_i32_1 = arith.constant 0 : i32
    return %c0_i32, %c0_i32_0 : i32, i32
  }
  func.func @transform_3(%arg0: i32, %arg1: i32) -> (i32, i32) {
    %c0_i32 = arith.constant 0 : i32
    %c0_i32_0 = arith.constant 0 : i32
    %c0_i32_1 = arith.constant 0 : i32
    return %c0_i32, %c0_i32_0 : i32, i32
  }
  func.func @transform_4(%arg0: i32, %arg1: i32) -> (i32, i32, i32) {
    %c0_i32 = arith.constant 0 : i32
    %c0_i32_0 = arith.constant 0 : i32
    return %arg0, %c0_i32, %arg1 : i32, i32, i32
  }
}

</mosaic_0001>

<bundles_post_ra>
// kernel: tpu_custom_call.1
= control target key start
LH: loop header
LB: loop body
LE: loop exit
PB: predicated region body
PF: predicated region fallthrough
CT: control target
= control target key end

     0   :  { %9 = vsyncpa [#allocation3], 0  ;;  %s1958_s0 = inlined_call_operand.vmem [shape: f32[2,4,18,18], index: 0, kind: input, shape index: {}]   ;;  %s1959_s1 = inlined_call_operand.vmem [shape: f32[2,9,4], index: 1, kind: input, shape index: {}]   ;;  %s1960_s2 = inlined_call_operand.vmem [shape: f32[8,4], index: 2, kind: input, shape index: {}]   ;;  %s1961_s3 = inlined_call_operand.vmem [shape: f32[8,1], index: 3, kind: input, shape index: {}]   ;;  %s1962_s4 = inlined_call_operand.hbm [shape: f32[2,8,256], index: 4, kind: output, shape index: {}]  }
   0x1   :  { %11 = vsyncpa [#allocation3 + $0x1], 0  ;;  %s1456_s15 = smov 0   ;;  %s1458_s16 = smov 0  }
   0x2   :  { %s1460_s17 = smov 0   ;;  %s1462_s18 = smov 0  }
   0x3   :  { %s1464_s19 = smov 0   ;;  %s1466_s20 = smov 0  }
   0x4 LB: > { %s1224_s21 = sadd.s32 4294967295, %s1415_s20   ;;  %s1225_s22 = sadd.s32 4294967294, %s1415_s20   ;;  %s1415_s20 = sphi %s1466_s20, %s17_s20   ;;  %s1411_s19 = sphi %s1464_s19, %s1991_s19   ;;  %s1407_s18 = sphi %s1462_s18, %s1990_s18   ;;  %s1403_s17 = sphi %s1460_s17, %s1989_s17   ;;  %s1399_s16 = sphi %s1458_s16, %s1988_s16   ;;  %s1395_s15 = sphi %s1456_s15, %s1987_s15  }
   0x5   : > { %s29_s23 = sadd.s32 1, %s1411_s19  ;;  %s132_s24 = sadd.s32 1, %s1403_s17 }
   0x6   : > { %p31_p0 = scmp.ge.s32.totalorder %s29_s23, 2  ;;  %p142_p1 = scmp.ne.s32.totalorder %s1403_s17, %s1399_s16 }
   0x7   : > { %p143_p2 = scmp.eq.s32.totalorder %s1224_s21, 1  ;;  %p148_p3 = scmp.ne.s32.totalorder %s1399_s16, %s1395_s15 }
   0x8   : > { %s1993_s23 = smov (%p31_p0, %s29_s23), 0  ;;  %p149_p5 = scmp.eq.s32.totalorder %s1225_s22, 1 }
   0x9   : > { %p1496_p4 = por %p143_p2, %p142_p1  ;;  %s127_s26 = ssub.s32 %s1411_s19, %s1993_s23 }
   0xa   : > { %p1228_p6 = scmp.ge.s32.totalorder %s1415_s20, 1  ;;  %p130_p7 = scmp.eq.s32.totalorder %s127_s26, 0 }
   0xb   : > { %p1503_p8 = por %p149_p5, %p148_p3  ;;  %p189_p9 = scmp.lt.s32.totalorder %s1415_s20, 3 }
   0xc   : > { %s1509_s28 = scalar_select %p130_p7, %s1403_s17, %s132_s24  }
   0xd   : > { %p190_p10 = pnand %p1228_p6, %p189_p9 }
   0xf   : > { %193 = sbr.rel (%p190_p10) target bundleno = 714 (0x2ca), region = 36 }
  0x14   : > { %p220_p11 = scmp.lt.s32.totalorder %s1407_s18, 1  ;;  %v240_v9 = vlaneseq  ;;  %s1417_s12 = smov 127   ;;  %vm1005_vm0 = vcmask 130048   ;;  %vm1007_vm1 = vcmask 261120   ;;  %vm1009_vm2 = vcmask 392192  }
  0x15   : > { %s1418_s13 = smov 126   ;;  %s1422_s14 = smov 32   ;;  %vm1011_vm3 = vcmask 523264   ;;  %vm1013_vm4 = vcmask 654336   ;;  %vm1015_vm5 = vcmask 785408   ;;  %vm1017_vm6 = vcmask 916480  }
  0x16   : > { %s221_s29 = scalar_select %p220_p11, %s1407_s18, 1  ;;  %v1516_v10 = vshrl.u32 %v240_v9, 7  ;;  %vm1037_vm7 = vcmask 1043456   ;;  %vm1033_vm8 = vcmask 31744  }
  0x17   : > { %s1423_s21 = smov 64   ;;  %s1424_s22 = smov 96  }
  0x18   : > { %s1266_s30 = sshll.u32 %s221_s29, 4  ;;  %s1268_s8 = smul.u32 96, %s221_s29  ;;  %1967 = vst [vmem:[#allocation5_spill] sm:$0xff] %v1516_v10  ;;  %v1524_v11 = vsub.s32 0, %v1516_v10  ;;  %v1527_v12 = vsub.s32 1, %v1516_v10  ;;  %v1530_v13 = vsub.s32 2, %v1516_v10 }
  0x19   : > { %s229_s7 = scalar_lea.vmem %s1959_s1, %s1266_s30  ;;  %v1533_v14 = vsub.s32 3, %v1516_v10  ;;  %s1425_s24 = smov 16  }
  0x1a   : > { %v1234_v0 = vld [vmem:[%s229_s7 + $0x1] ss:$0 sm:$0xff]  ;;  %v1237_v1 = vld [vmem:[%s229_s7 + $0x4] ss:$0 sm:$0xff]  ;;  %v1235_v2 = vld [vmem:[%s229_s7 + $0x2] ss:$0 sm:$0xff]  ;;  %s1521_s11 = scalar_lea.vmem %s1958_s0, %s1268_s8 }
  0x1b   : > { %262 = vbcast.lane.b32.xlu0 %v1234_v0, 256  ;;  %334 = vbcast.lane.b32.xlu1 %v1237_v1, 256  ;;  %v1238_v3 = vld [vmem:[%s229_s7 + $0x5] ss:$0 sm:$0xff]  ;;  %v1240_v4 = vld [vmem:[%s229_s7 + $0x7] ss:$0 sm:$0xff] }
  0x1c   : > { %v1241_v5 = vld [vmem:[%s229_s7 + $0x8] ss:$0 sm:$0xff]  ;;  %v1233_v6 = vld [vmem:[%s229_s7] ss:$0 sm:$0xff]  ;;  %v1236_v7 = vld [vmem:[%s229_s7 + $0x3] ss:$0 sm:$0xff] }
  0x1d   : > { %v1239_v8 = vld [vmem:[%s229_s7 + $0x6] ss:$0 sm:$0xff]  ;;  %v1539_v17 = vld [vmem:[%s1521_s11 + $0x8] sm:$0xff]  ;;  %v1548_v24 = vld [vmem:[%s1521_s11 + $0x50] sm:$0xff]  ;;  %s1426_s26 = smov 48   ;;  %s1427_s29 = smov 80  }
  0x1e   : > { %v1536_v16 = vld [vmem:[%s1521_s11 + $0x20] sm:$0xff]  ;;  %v1551_v25 = vld [vmem:[%s1521_s11 + $0x38] sm:$0xff]  ;;  %v1573_v36 = vld [vmem:[%s1521_s11 + $0x48] sm:$0xff]  ;;  %s1429_s30 = smov 112   ;;  %s217_s9 = sand.u32 1, %s1399_s16  }
  0x1f   : > { %286 = vbcast.lane.b32.xlu0 %v1235_v2, 256  ;;  %358 = vbcast.lane.b32.xlu1 %v1238_v3, 256  ;;  %v1560_v30 = vld [vmem:[%s1521_s11 + $0x18] sm:$0xff]  ;;  %v1563_v31 = vld [vmem:[%s1521_s11] sm:$0xff]  ;;  %v1576_v37 = vld [vmem:[%s1521_s11 + $0x30] sm:$0xff]  ;;  %s1229_s10 = sshll.u32 %s217_s9, 4 }
  0x20   : > { %v1592_v45 = vld [vmem:[%s1521_s11 + $0xa] sm:$0xff]  ;;  %v1595_v46 = vld [vmem:[%s1521_s11 + $0x22] sm:$0xff]  ;;  %v1602_v51 = vld [vmem:[%s1521_s11 + $0x3a] sm:$0xff] }
  0x21   : > { %v1605_v52 = vld [vmem:[%s1521_s11 + $0x2] sm:$0xff]  ;;  %v1608_v53 = vld [vmem:[%s1521_s11 + $0x1a] sm:$0xff]  ;;  %v1619_v58 = vld [vmem:[%s1521_s11 + $0x52] sm:$0xff] }
  0x22   : > { %v1631_v0 = vld [vmem:[%s1521_s11 + $0x32] sm:$0xff]  ;;  %v1634_v1 = vld [vmem:[%s1521_s11 + $0x4a] sm:$0xff] }
  0x23   : > { %406 = vbcast.lane.b32.xlu0 %v1240_v4, 256  ;;  %430 = vbcast.lane.b32.xlu1 %v1241_v5, 256 }
  0x27   : > { %238 = vbcast.lane.b32.xlu0 %v1233_v6, 256  ;;  %310 = vbcast.lane.b32.xlu1 %v1236_v7, 256 }
  0x2b   : > { %382 = vbcast.lane.b32.xlu0 %v1239_v8, 256 }
  0x8d   : > { %v263_v15 = vpop.permute.xlu0 %262  ;;  %v1555_v27 = vpop.permute.xlu1 %334 }
  0x8e   : > { %v267_v18 = vrot.slane %v263_v15, %v1524_v11  ;;  %v271_v19 = vrot.slane %v263_v15, %v1527_v12  ;;  %v275_v20 = vrot.slane %v263_v15, %v1530_v13  ;;  %v279_v21 = vrot.slane %v263_v15, %v1533_v14 }
  0x8f   : > { %v1585_v40 = vrot.slane %v1555_v27, %v1524_v11 }
  0x90   : > { %v476_v22 = vmul.f32 %v1536_v16, %v271_v19  ;;  %v474_v23 = vmul.f32 %v1539_v17, %v267_v18  ;;  %v480_v28 = vmul.f32 %v1548_v24, %v279_v21  ;;  %v478_v29 = vmul.f32 %v1551_v25, %v275_v20 }
  0x91   : > { %v287_v26 = vpop.permute.xlu0 %286  ;;  %v1578_v38 = vpop.permute.xlu1 %358  ;;  %v475_v41 = vmul.f32 %v1560_v30, %v271_v19  ;;  %v473_v42 = vmul.f32 %v1563_v31, %v267_v18  ;;  %v479_v47 = vmul.f32 %v1573_v36, %v279_v21  ;;  %v477_v48 = vmul.f32 %v1576_v37, %v275_v20 }
  0x92   : > { %495 = vrot.lane.b32.xlu1 %v476_v22, %s1417_s12  ;;  %491 = vrot.lane.b32.xlu0 %v474_v23, %s1417_s12  ;;  %v291_v32 = vrot.slane %v287_v26, %v1524_v11  ;;  %v295_v33 = vrot.slane %v287_v26, %v1527_v12  ;;  %v1570_v35 = vrot.slane %v287_v26, %v1530_v13 }
  0x93   : > { %v1581_v39 = vrot.slane %v287_v26, %v1533_v14 }
  0x94   : > { %v524_v49 = vmul.f32 %v1536_v16, %v295_v33  ;;  %v522_v50 = vmul.f32 %v1539_v17, %v291_v32  ;;  %v526_v55 = vmul.f32 %v1551_v25, %v1570_v35  ;;  %v1615_v56 = vmul.f32 %v1560_v30, %v295_v33 }
  0x95   : > { %v407_v34 = vpop.permute.xlu0 %406  ;;  %v431_v59 = vpop.permute.xlu1 %430  ;;  %v528_v60 = vmul.f32 %v1548_v24, %v1581_v39  ;;  %v1624_v61 = vmul.f32 %v1563_v31, %v291_v32 }
  0x96   : > { %503 = vrot.lane.b32.xlu1 %v480_v28, %s1417_s12  ;;  %499 = vrot.lane.b32.xlu0 %v478_v29, %s1417_s12  ;;  %v411_v43 = vrot.slane %v407_v34, %v1524_v11  ;;  %v415_v44 = vrot.slane %v407_v34, %v1527_v12  ;;  %v419_v57 = vrot.slane %v407_v34, %v1530_v13 }
  0x97   : > { %v423_v62 = vrot.slane %v407_v34, %v1533_v14  ;;  %v435_v7 = vrot.slane %v431_v59, %v1524_v11  ;;  %v439_v8 = vrot.slane %v431_v59, %v1527_v12  ;;  %v443_v9 = vrot.slane %v431_v59, %v1530_v13 }
  0x98   : > { %v1628_v63 = vmul.f32 %v1592_v45, %v411_v43  ;;  %v1637_v2 = vmul.f32 %v1595_v46, %v415_v44  ;;  %v1640_v3 = vmul.f32 %v1602_v51, %v419_v57  ;;  %v1643_v4 = vmul.f32 %v1605_v52, %v411_v43 }
  0x99   : > { %v239_v54 = vpop.permute.xlu0 %238  ;;  %v1646_v5 = vmul.f32 %v1608_v53, %v415_v44  ;;  %v1649_v6 = vmul.f32 %v1619_v58, %v423_v62  ;;  %v447_v15 = vrot.slane %v431_v59, %v1533_v14  ;;  %v1658_v18 = vmul.f32 %v1631_v0, %v419_v57  ;;  %v311_v20 = vpop.permute.xlu1 %310  ;;  %v1697_v59 = vld [vmem:[%s1521_s11 + $0x9] sm:$0xff] }
  0x9a   : > { %493 = vrot.lane.b32.xlu1 %v475_v41, %s1417_s12  ;;  %489 = vrot.lane.b32.xlu0 %v473_v42, %s1417_s12  ;;  %v1661_v19 = vmul.f32 %v1634_v1, %v423_v62  ;;  %v1664_v21 = vmul.f32 %v1592_v45, %v435_v7  ;;  %v1667_v22 = vmul.f32 %v1595_v46, %v439_v8  ;;  %v1700_v62 = vld [vmem:[%s1521_s11 + $0x21] sm:$0xff] }
  0x9b   : > { %v1670_v23 = vmul.f32 %v1602_v51, %v443_v9  ;;  %v1673_v26 = vmul.f32 %v1605_v52, %v435_v7  ;;  %v1676_v29 = vmul.f32 %v1619_v58, %v447_v15  ;;  %v1679_v32 = vmul.f32 %v1608_v53, %v439_v8  ;;  %v1703_v7 = vld [vmem:[%s1521_s11 + $0x39] sm:$0xff] }
  0x9c   : > { %v1682_v33 = vmul.f32 %v1631_v0, %v443_v9  ;;  %v1685_v34 = vmul.f32 %v1634_v1, %v447_v15  ;;  %v315_v41 = vrot.slane %v311_v20, %v1524_v11  ;;  %v319_v42 = vrot.slane %v311_v20, %v1527_v12 }
  0x9d   : > { %1968 = vst [vmem:[#allocation6_spill] sm:$0xff] %v1673_v26  ;;  %v383_v28 = vpop.permute.xlu0 %382  ;;  %1969 = vst [vmem:[#allocation7_spill] sm:$0xff] %v1679_v32  ;;  %v323_v43 = vrot.slane %v311_v20, %v1530_v13  ;;  %v327_v44 = vrot.slane %v311_v20, %v1533_v14  ;;  %v255_v9 = vrot.slane %v239_v54, %v1533_v14 }
  0x9e   : > { %501 = vrot.lane.b32.xlu1 %v479_v47, %s1417_s12  ;;  %497 = vrot.lane.b32.xlu0 %v477_v48, %s1417_s12  ;;  %1970 = vst [vmem:[#allocation8_spill] sm:$0xff] %v1682_v33  ;;  %1971 = vst [vmem:[#allocation9_spill] sm:$0xff] %v1685_v34  ;;  %v387_v47 = vrot.slane %v383_v28, %v1524_v11  ;;  %v391_v48 = vrot.slane %v383_v28, %v1527_v12 }
  0x9f   : > { %v395_v57 = vrot.slane %v383_v28, %v1530_v13  ;;  %v399_v8 = vrot.slane %v383_v28, %v1533_v14  ;;  %v251_v15 = vrot.slane %v239_v54, %v1530_v13  ;;  %v1711_v20 = vmul.f32 %v1697_v59, %v315_v41  ;;  %v1249_v28 = vld [vmem:[%s1521_s11 + $0x51] sm:$0xff] }
  0xa0   : > { %v1714_v10 = vmul.f32 %v1700_v62, %v319_v42  ;;  %v1717_v34 = vmul.f32 %v1703_v7, %v323_v43 }
  0xa1   : > { %1972 = vst [vmem:[#allocation10_spill] sm:$0xff] %v1711_v20  ;;  %v1244_v20 = vld [vmem:[%s1521_s11 + $0x19] sm:$0xff] }
  0xa2   : > { %543 = vrot.lane.b32.xlu1 %v524_v49, %s1418_s13  ;;  %539 = vrot.lane.b32.xlu0 %v522_v50, %s1418_s13  ;;  %v247_v49 = vrot.slane %v239_v54, %v1527_v12  ;;  %v243_v50 = vrot.slane %v239_v54, %v1524_v11  ;;  %1973 = vst [vmem:[#allocation11_spill] sm:$0xff] %v1714_v10  ;;  %1974 = vst [vmem:[#allocation12_spill] sm:$0xff] %v1717_v34  ;;  %v1242_v10 = vld [vmem:[%s1521_s11 + $0x1] sm:$0xff] }
  0xa3   : > { %v1727_v54 = vmul.f32 %v1548_v24, %v255_v9  ;;  %v1737_v34 = vmul.f32 %v1551_v25, %v251_v15  ;;  %v1246_v24 = vld [vmem:[%s1521_s11 + $0x31] sm:$0xff] }
  0xa4   : > { %v1721_v33 = vmul.f32 %v1536_v16, %v247_v49  ;;  %v1724_v32 = vmul.f32 %v1539_v17, %v243_v50  ;;  %v1730_v26 = vmul.f32 %v1560_v30, %v247_v49  ;;  %v1740_v16 = vmul.f32 %v1563_v31, %v243_v50 }
  0xa5   : > { %1975 = vst [vmem:[#allocation13_spill] sm:$0xff] %v1727_v54  ;;  %v1743_v17 = vmul.f32 %v1573_v36, %v255_v9  ;;  %v1248_v54 = vld [vmem:[%s1521_s11 + $0x49] sm:$0xff]  ;;  %v1748_v30 = vmul.f32 %v1576_v37, %v251_v15  ;;  %v1750_v49 = vmul.f32 %v1249_v28, %v327_v44  ;;  %v1761_v31 = vmul.f32 %v1592_v45, %v387_v47  ;;  %s1267_s11 = sshll.u32 %s1407_s18, 8 }
  0xa6   : > { %1976 = vst [vmem:[#allocation14_spill] sm:$0xff] %v1730_v26  ;;  %551 = vrot.lane.b32.xlu1 %v528_v60, %s1418_s13  ;;  %547 = vrot.lane.b32.xlu0 %v526_v55, %s1418_s13  ;;  %v1752_v60 = vmul.f32 %v1242_v10, %v315_v41  ;;  %v1754_v55 = vmul.f32 %v1244_v20, %v319_v42 }
  0xa7   : > { %v1756_v26 = vmul.f32 %v1246_v24, %v323_v43  ;;  %v1758_v25 = vmul.f32 %v1248_v54, %v327_v44  ;;  %v1764_v50 = vmul.f32 %v1595_v46, %v391_v48  ;;  %v1767_v9 = vmul.f32 %v1602_v51, %v395_v57 }
  0xa8   : > { %v1770_v15 = vmul.f32 %v1619_v58, %v399_v8  ;;  %v1773_v41 = vmul.f32 %v1605_v52, %v387_v47  ;;  %v1776_v42 = vmul.f32 %v1608_v53, %v391_v48  ;;  %v343_v45 = vrot.slane %v1555_v27, %v1527_v12 }
  0xa9   : > { %v1785_v46 = vmul.f32 %v1631_v0, %v395_v57  ;;  %v1788_v51 = vmul.f32 %v1634_v1, %v399_v8  ;;  %v527_v52 = vmul.f32 %v1573_v36, %v1581_v39  ;;  %v525_v53 = vmul.f32 %v1576_v37, %v1570_v35 }
  0xaa   : > { %541 = vrot.lane.b32.xlu1 %v1615_v56, %s1418_s13  ;;  %537 = vrot.lane.b32.xlu0 %v1624_v61, %s1418_s13  ;;  %v596_v56 = vmul.f32 %v1697_v59, %v1585_v40  ;;  %v598_v58 = vmul.f32 %v1700_v62, %v343_v45  ;;  %v347_v61 = vrot.slane %v1555_v27, %v1530_v13 }
  0xab   : > { %v351_v0 = vrot.slane %v1555_v27, %v1533_v14  ;;  %v595_v37 = vmul.f32 %v1242_v10, %v1585_v40  ;;  %v597_v39 = vmul.f32 %v1244_v20, %v343_v45  ;;  %v363_v27 = vrot.slane %v1578_v38, %v1524_v11 }
  0xac   : > { %v600_v35 = vmul.f32 %v1703_v7, %v347_v61  ;;  %v367_v1 = vrot.slane %v1578_v38, %v1527_v12  ;;  %v599_v43 = vmul.f32 %v1246_v24, %v347_v61  ;;  %v371_v48 = vrot.slane %v1578_v38, %v1530_v13  ;;  %v1983_v61 = vld [vmem:[#allocation10_spill] sm:$0xff] }
  0xad   : > { %v602_v36 = vmul.f32 %v1249_v28, %v351_v0  ;;  %v601_v44 = vmul.f32 %v1248_v54, %v351_v0  ;;  %v644_v47 = vmul.f32 %v1697_v59, %v363_v27  ;;  %v375_v57 = vrot.slane %v1578_v38, %v1533_v14  ;;  %v1977_v14 = vld [vmem:[#allocation6_spill] sm:$0xff]  ;;  %v1978_v38 = vld [vmem:[#allocation7_spill] sm:$0xff] }
  0xae   : > { %549 = vrot.lane.b32.xlu1 %v527_v52, %s1418_s13  ;;  %545 = vrot.lane.b32.xlu0 %v525_v53, %s1418_s13  ;;  %v646_v40 = vmul.f32 %v1700_v62, %v367_v1  ;;  %v648_v11 = vmul.f32 %v1703_v7, %v371_v48  ;;  %v643_v59 = vmul.f32 %v1242_v10, %v363_v27  ;;  %v1419_v10 = vmov 0.0  }
  0xaf   : > { %v650_v12 = vmul.f32 %v1249_v28, %v375_v57  ;;  %v645_v8 = vmul.f32 %v1244_v20, %v367_v1  ;;  %v647_v13 = vmul.f32 %v1246_v24, %v371_v48  ;;  %v649_v62 = vmul.f32 %v1248_v54, %v375_v57  ;;  %1108 = vmatprep.mubr.f32.mxu0 %v1419_v10  ;;  %v1982_v20 = vld [vmem:[#allocation14_spill] sm:$0xff]  ;;  %v1985_v1 = vld [vmem:[#allocation12_spill] sm:$0xff] }
  0xb2   : > { %613 = vrot.lane.b32.xlu1 %v596_v56, %s1417_s12  ;;  %617 = vrot.lane.b32.xlu0 %v598_v58, %s1417_s12 }
  0xb6   : > { %621 = vrot.lane.b32.xlu1 %v600_v35, %s1417_s12  ;;  %625 = vrot.lane.b32.xlu0 %v602_v36, %s1417_s12  ;;  %v1984_v35 = vld [vmem:[#allocation11_spill] sm:$0xff] }
  0xba   : > { %611 = vrot.lane.b32.xlu1 %v595_v37, %s1417_s12  ;;  %615 = vrot.lane.b32.xlu0 %v597_v39, %s1417_s12 }
  0xbe   : > { %619 = vrot.lane.b32.xlu1 %v599_v43, %s1417_s12  ;;  %623 = vrot.lane.b32.xlu0 %v601_v44, %s1417_s12 }
  0xc2   : > { %661 = vrot.lane.b32.xlu1 %v644_v47, %s1418_s13  ;;  %665 = vrot.lane.b32.xlu0 %v646_v40, %s1418_s13 }
  0xc6   : > { %669 = vrot.lane.b32.xlu1 %v648_v11, %s1418_s13  ;;  %673 = vrot.lane.b32.xlu0 %v650_v12, %s1418_s13 }
  0xca   : > { %659 = vrot.lane.b32.xlu1 %v643_v59, %s1418_s13  ;;  %663 = vrot.lane.b32.xlu0 %v645_v8, %s1418_s13 }
  0xce   : > { %667 = vrot.lane.b32.xlu1 %v647_v13, %s1418_s13  ;;  %671 = vrot.lane.b32.xlu0 %v649_v62, %s1418_s13 }
  0xd2   : > { %735 = vrot.lane.b32.xlu1 %v1628_v63, %s1417_s12  ;;  %739 = vrot.lane.b32.xlu0 %v1637_v2, %s1417_s12  ;;  %v1979_v63 = vld [vmem:[#allocation8_spill] sm:$0xff]  ;;  %v1980_v2 = vld [vmem:[#allocation9_spill] sm:$0xff] }
  0xd6   : > { %743 = vrot.lane.b32.xlu1 %v1640_v3, %s1417_s12  ;;  %747 = vrot.lane.b32.xlu0 %v1649_v6, %s1417_s12 }
  0xda   : > { %733 = vrot.lane.b32.xlu1 %v1643_v4, %s1417_s12  ;;  %737 = vrot.lane.b32.xlu0 %v1646_v5, %s1417_s12 }
  0xde   : > { %741 = vrot.lane.b32.xlu1 %v1658_v18, %s1417_s12  ;;  %745 = vrot.lane.b32.xlu0 %v1661_v19, %s1417_s12  ;;  %s219_s12 = scalar_lea.vmem [#allocation2], %s1229_s10 }
  0xe2   : > { %783 = vrot.lane.b32.xlu1 %v1664_v21, %s1418_s13  ;;  %787 = vrot.lane.b32.xlu0 %v1667_v22, %s1418_s13  ;;  %v1981_v21 = vld [vmem:[#allocation13_spill] sm:$0xff] }
  0xe6   : > { %791 = vrot.lane.b32.xlu1 %v1670_v23, %s1418_s13  ;;  %795 = vrot.lane.b32.xlu0 %v1676_v29, %s1418_s13 }
  0xea   : > { %781 = vrot.lane.b32.xlu1 %v1977_v14, %s1418_s13  ;;  %785 = vrot.lane.b32.xlu0 %v1978_v38, %s1418_s13 }
  0xee   : > { %789 = vrot.lane.b32.xlu1 %v1979_v63, %s1418_s13  ;;  %793 = vrot.lane.b32.xlu0 %v1980_v2, %s1418_s13  ;;  %s1134_s13 = sshll.u32 %s219_s12, 4  ;;  %s1135_s13 = int_to_ptr.vmem [resolvable:$true] %s1134_s13 }
 0x104   : > { %v496_v3 = vpop.permute.xlu1 %495  ;;  %v492_v4 = vpop.permute.xlu0 %491 }
 0x105   : > { %v516_v5 = vadd.f32 %v496_v3, %v1721_v33  ;;  %v514_v6 = vadd.f32 %v492_v4, %v1724_v32 }
 0x108   : > { %v504_v18 = vpop.permute.xlu1 %503  ;;  %v500_v19 = vpop.permute.xlu0 %499 }
 0x109   : > { %v520_v22 = vadd.f32 %v504_v18, %v1981_v21  ;;  %v518_v23 = vadd.f32 %v500_v19, %v1737_v34 }
 0x10c   : > { %v494_v29 = vpop.permute.xlu1 %493  ;;  %v490_v7 = vpop.permute.xlu0 %489 }
 0x10d   : > { %v515_v28 = vadd.f32 %v494_v29, %v1982_v20  ;;  %v513_v54 = vadd.f32 %v490_v7, %v1740_v16 }
 0x110   : > { %v502_v24 = vpop.permute.xlu1 %501  ;;  %v498_v45 = vpop.permute.xlu0 %497 }
 0x111   : > { %v519_v52 = vadd.f32 %v502_v24, %v1743_v17  ;;  %v517_v33 = vadd.f32 %v498_v45, %v1748_v30 }
 0x114   : > { %v544_v53 = vpop.permute.xlu1 %543  ;;  %v540_v32 = vpop.permute.xlu0 %539 }
 0x115   : > { %v564_v56 = vadd.f32 %v544_v53, %v516_v5  ;;  %v562_v58 = vadd.f32 %v540_v32, %v514_v6 }
 0x117   : > { %v588_v0 = vadd.f32 %v1983_v61, %v562_v58  ;;  %v590_v34 = vadd.f32 %v1984_v35, %v564_v56 }
 0x118   : > { %v552_v36 = vpop.permute.xlu1 %551  ;;  %v548_v37 = vpop.permute.xlu0 %547 }
 0x119   : > { %v568_v39 = vadd.f32 %v552_v36, %v520_v22  ;;  %v566_v27 = vadd.f32 %v548_v37, %v518_v23 }
 0x11b   : > { %v592_v16 = vadd.f32 %v1985_v1, %v566_v27  ;;  %v594_v43 = vadd.f32 %v1750_v49, %v568_v39 }
 0x11c   : > { %v542_v44 = vpop.permute.xlu1 %541  ;;  %v538_v17 = vpop.permute.xlu0 %537 }
 0x11d   : > { %v563_v47 = vadd.f32 %v542_v44, %v515_v28  ;;  %v561_v30 = vadd.f32 %v538_v17, %v513_v54  ;;  %v1420_v17 = vmov 1983009808  }
 0x11f   : > { %v587_v40 = vadd.f32 %v1752_v60, %v561_v30  ;;  %v589_v48 = vadd.f32 %v1754_v55, %v563_v47 }
 0x120   : > { %v550_v57 = vpop.permute.xlu1 %549  ;;  %v546_v11 = vpop.permute.xlu0 %545 }
 0x121   : > { %v567_v12 = vadd.f32 %v550_v57, %v519_v52  ;;  %v565_v59 = vadd.f32 %v546_v11, %v517_v33 }
 0x123   : > { %v591_v8 = vadd.f32 %v1756_v26, %v565_v59  ;;  %v593_v13 = vadd.f32 %v1758_v25, %v567_v12 }
 0x124   : > { %v614_v62 = vpop.permute.xlu1 %613  ;;  %v618_v14 = vpop.permute.xlu0 %617 }
 0x125   : > { %v636_v5 = vadd.f32 %v614_v62, %v588_v0  ;;  %v638_v60 = vadd.f32 %v618_v14, %v590_v34 }
 0x128   : > { %v622_v38 = vpop.permute.xlu1 %621  ;;  %v626_v49 = vpop.permute.xlu0 %625 }
 0x129   : > { %v640_v21 = vadd.f32 %v622_v38, %v592_v16  ;;  %v642_v22 = vadd.f32 %v626_v49, %v594_v43 }
 0x12c   : > { %v612_v63 = vpop.permute.xlu1 %611  ;;  %v616_v2 = vpop.permute.xlu0 %615 }
 0x12d   : > { %v635_v28 = vadd.f32 %v612_v63, %v587_v40  ;;  %v637_v54 = vadd.f32 %v616_v2, %v589_v48  ;;  %v1421_v40 = vmov 1934713408  }
 0x12e   : > { %v848_v48 = vunpack.c.l.s4 %v1421_v40 }
 0x130   : > { %v620_v3 = vpop.permute.xlu1 %619  ;;  %v624_v4 = vpop.permute.xlu0 %623  ;;  %v849_v62 = vunpack.c.0.s8 %v848_v48 }
 0x131   : > { %v639_v56 = vadd.f32 %v620_v3, %v591_v8  ;;  %v641_v58 = vadd.f32 %v624_v4, %v593_v13 }
 0x134   : > { %v662_v6 = vpop.permute.xlu1 %661  ;;  %v666_v55 = vpop.permute.xlu0 %665 }
 0x135   : > { %v684_v18 = vadd.f32 %v662_v6, %v636_v5  ;;  %v686_v19 = vadd.f32 %v666_v55, %v638_v60 }
 0x137   : > { %v710_v26 = vadd.f32 %v1761_v31, %v684_v18  ;;  %v712_v25 = vadd.f32 %v1764_v50, %v686_v19 }
 0x138   : > { %v670_v23 = vpop.permute.xlu1 %669  ;;  %v674_v29 = vpop.permute.xlu0 %673 }
 0x139   : > { %v688_v7 = vadd.f32 %v670_v23, %v640_v21  ;;  %v690_v20 = vadd.f32 %v674_v29, %v642_v22 }
 0x13b   : > { %v714_v24 = vadd.f32 %v1767_v9, %v688_v7  ;;  %v716_v45 = vadd.f32 %v1770_v15, %v690_v20 }
 0x13c   : > { %v660_v52 = vpop.permute.xlu1 %659  ;;  %v664_v33 = vpop.permute.xlu0 %663 }
 0x13d   : > { %v683_v53 = vadd.f32 %v660_v52, %v635_v28  ;;  %v685_v32 = vadd.f32 %v664_v33, %v637_v54 }
 0x13f   : > { %v709_v31 = vadd.f32 %v1773_v41, %v683_v53  ;;  %v711_v50 = vadd.f32 %v1776_v42, %v685_v32  ;;  %v816_v41 = vunpack.c.l.s4 %v1420_v17 }
 0x140   : > { %v668_v61 = vpop.permute.xlu1 %667  ;;  %v672_v0 = vpop.permute.xlu0 %671 }
 0x141   : > { %v687_v35 = vadd.f32 %v668_v61, %v639_v56  ;;  %v689_v34 = vadd.f32 %v672_v0, %v641_v58  ;;  %v817_v30 = vunpack.c.0.s8 %v816_v41 }
 0x143   : > { %v713_v36 = vadd.f32 %v1785_v46, %v687_v35  ;;  %v715_v9 = vadd.f32 %v1788_v51, %v689_v34  ;;  %v1986_v51 = vld [vmem:[#allocation5_spill] sm:$0xff] }
 0x144   : > { %v736_v37 = vpop.permute.xlu1 %735  ;;  %v740_v15 = vpop.permute.xlu0 %739  ;;  %v820_v59 = vsub.s32 %v817_v30, %v1986_v51  ;;  %v852_v55 = vsub.s32 %v849_v62, %v1986_v51 }
 0x145   : > { %v758_v57 = vadd.f32 %v736_v37, %v710_v26  ;;  %v760_v11 = vadd.f32 %v740_v15, %v712_v25 }
 0x148   : > { %v744_v39 = vpop.permute.xlu1 %743  ;;  %v748_v27 = vpop.permute.xlu0 %747 }
 0x149   : > { %v762_v46 = vadd.f32 %v744_v39, %v714_v24  ;;  %v764_v12 = vadd.f32 %v748_v27, %v716_v45 }
 0x14c   : > { %v734_v1 = vpop.permute.xlu1 %733  ;;  %v738_v16 = vpop.permute.xlu0 %737 }
 0x14d   : > { %v757_v26 = vadd.f32 %v734_v1, %v709_v31  ;;  %v759_v25 = vadd.f32 %v738_v16, %v711_v50 }
 0x150   : > { %v742_v43 = vpop.permute.xlu1 %741  ;;  %v746_v44 = vpop.permute.xlu0 %745 }
 0x151   : > { %v761_v23 = vadd.f32 %v742_v43, %v713_v36  ;;  %v763_v29 = vadd.f32 %v746_v44, %v715_v9 }
 0x154   : > { %v784_v47 = vpop.permute.xlu1 %783  ;;  %v788_v42 = vpop.permute.xlu0 %787 }
 0x155   : > { %v806_v14 = vadd.f32 %v784_v47, %v758_v57  ;;  %v808_v38 = vadd.f32 %v788_v42, %v760_v11  ;;  %v1428_v11 = vmov 0  }
 0x156   : > { %1337 = vset.pattern.permute.xlu1 %v1428_v11  ;;  %1338 = vset.pattern.permute.xlu0 %v1428_v11 }
 0x158   : > { %v792_v8 = vpop.permute.xlu1 %791  ;;  %v796_v13 = vpop.permute.xlu0 %795 }
 0x159   : > { %v810_v49 = vadd.f32 %v792_v8, %v762_v46  ;;  %v812_v63 = vadd.f32 %v796_v13, %v764_v12  ;;  %v1027_v46 = vld [vmem:[%s1961_s3] sm:$0xff] }
 0x15b   : > { %v881_v2 = vcombine.low %v806_v14, %v810_v49  ;;  %v882_v3 = vcombine.high %v806_v14, %v810_v49  ;;  %v897_v4 = vcombine.low %v808_v38, %v812_v63  ;;  %v898_v5 = vcombine.high %v808_v38, %v812_v63 }
 0x15c   : > { %v782_v60 = vpop.permute.xlu1 %781  ;;  %v786_v6 = vpop.permute.xlu0 %785 }
 0x15d   : > { %v889_v18 = vrot.slane %v881_v2, %v820_v59  ;;  %v896_v19 = vrot.slane %v882_v3, %v820_v59  ;;  %v905_v21 = vrot.slane %v897_v4, %v820_v59  ;;  %v912_v22 = vrot.slane %v898_v5, %v820_v59 }
 0x15e   : > { %v805_v24 = vadd.f32 %v782_v60, %v757_v26  ;;  %v807_v33 = vadd.f32 %v786_v6, %v759_v25 }
 0x15f   : > { %v913_v7 = vcombine.low %v889_v18, %v905_v21  ;;  %v914_v20 = vcombine.high %v889_v18, %v905_v21  ;;  %v929_v28 = vcombine.low %v896_v19, %v912_v22  ;;  %v930_v54 = vcombine.high %v896_v19, %v912_v22 }
 0x160   : > { %v790_v45 = vpop.permute.xlu1 %789  ;;  %v794_v52 = vpop.permute.xlu0 %793 }
 0x161   : > { %v809_v53 = vadd.f32 %v790_v45, %v761_v23  ;;  %v811_v32 = vadd.f32 %v794_v52, %v763_v29  ;;  %v928_v56 = vrot.slane %v914_v20, %v852_v55  ;;  %v937_v31 = vrot.slane %v929_v28, %v852_v55 }
 0x162   : > { %v944_v1 = vrot.slane %v930_v54, %v852_v55  ;;  %v921_v43 = vrot.slane %v913_v7, %v852_v55  ;;  %v1026_v54 = vld [vmem:[%s1960_s2] sm:$0xff] }
 0x163   : > { %v813_v58 = vcombine.low %v805_v24, %v809_v53  ;;  %v814_v61 = vcombine.high %v805_v24, %v809_v53  ;;  %v829_v0 = vcombine.low %v807_v33, %v811_v32  ;;  %v830_v35 = vcombine.high %v807_v33, %v811_v32  ;;  %982 = vrot.lane.b32.xlu1 %v928_v56, %s1422_s14 }
 0x164   : > { %v945_v44 = vcombine.high %v921_v43, %v1419_v10  ;;  %v946_v41 = vcombine.high %v928_v56, %v1419_v10  ;;  %v947_v30 = vcombine.high %v937_v31, %v1419_v10  ;;  %v948_v48 = vcombine.high %v944_v1, %v1419_v10 }
 0x165   : > { %v821_v50 = vrot.slane %v813_v58, %v820_v59  ;;  %v828_v34 = vrot.slane %v814_v61, %v820_v59  ;;  %v837_v36 = vrot.slane %v829_v0, %v820_v59  ;;  %v844_v9 = vrot.slane %v830_v35, %v820_v59 }
 0x167   : > { %v845_v37 = vcombine.low %v821_v50, %v837_v36  ;;  %990 = vrot.lane.b32.xlu1 %v937_v31, %s1423_s21  ;;  %v846_v15 = vcombine.high %v821_v50, %v837_v36  ;;  %v861_v39 = vcombine.low %v828_v34, %v844_v9  ;;  %v862_v27 = vcombine.high %v828_v34, %v844_v9 }
 0x169   : > { %v860_v16 = vrot.slane %v846_v15, %v852_v55  ;;  %v869_v17 = vrot.slane %v861_v39, %v852_v55  ;;  %v876_v47 = vrot.slane %v862_v27, %v852_v55  ;;  %v853_v42 = vrot.slane %v845_v37, %v852_v55 }
 0x16b   : > { %998 = vrot.lane.b32.xlu1 %v944_v1, %s1424_s22  ;;  %954 = vrot.lane.b32.xlu0 %v860_v16, %s1422_s14  ;;  %v877_v40 = vcombine.high %v853_v42, %v1419_v10  ;;  %v878_v57 = vcombine.high %v860_v16, %v1419_v10  ;;  %v879_v12 = vcombine.high %v869_v17, %v1419_v10 }
 0x16c   : > { %v880_v51 = vcombine.high %v876_v47, %v1419_v10 }
 0x16f   : > { %978 = vrot.lane.b32.xlu1 %v945_v44, %s1425_s24  ;;  %962 = vrot.lane.b32.xlu0 %v869_v17, %s1423_s21 }
 0x173   : > { %986 = vrot.lane.b32.xlu1 %v946_v41, %s1426_s26  ;;  %970 = vrot.lane.b32.xlu0 %v876_v47, %s1424_s22  ;;  %s1132_s22 = scalar_lea.hbm %s1962_s4, %s1267_s11 }
 0x177   : > { %994 = vrot.lane.b32.xlu1 %v947_v30, %s1427_s29  ;;  %950 = vrot.lane.b32.xlu0 %v877_v40, %s1425_s24  ;;  %s1118_s24 = scalar_lea.sflag [#allocation3], %s217_s9 }
 0x17b   : > { %1002 = vrot.lane.b32.xlu1 %v948_v48, %s1429_s30  ;;  %958 = vrot.lane.b32.xlu0 %v878_v57, %s1426_s26  ;;  %s1339_s26 = scalar_lea.vmem %s1135_s13, 256 }
 0x17c   : > { %p1340_p12 = scmp.ne.s32.totalorder %s1135_s13, %s1339_s26 }
 0x17e   : > { %p1341_p13 = pnand %p1340_p12, %p1496_p4 }
 0x17f   : > { %966 = vrot.lane.b32.xlu0 %v879_v12, %s1427_s29  ;;  %1030 = vperm.xlu1 %1337, %v1027_v46   ;;  %s1430_s29 = smov [#allocation2]  }
 0x180   : > { %p1342_p0 = pneg %p1341_p13  ;;  %s1343_s18 = sshll.u32 %s1430_s29, 4  ;;  %s1344_s18 = int_to_ptr.vmem [resolvable:$false] %s1343_s18 }
 0x181   : > { %p1346_p1 = scmp.lt.s32.totalorder %s1135_s13, %s1344_s18 }
 0x183   : > { %974 = vrot.lane.b32.xlu0 %v880_v51, %s1429_s30  ;;  %s1345_s30 = scalar_lea.vmem %s1344_s18, 512 }
 0x184   : > { %p1347_p2 = scmp.lt.s32.totalorder %s1345_s30, %s1339_s26 }
 0x186   : > { %p1348_p3 = por %p1347_p2, %p1346_p1 }
 0x188   : > { %p1349_p5 = pnand %p1348_p3, %p1342_p0 }
 0x1d5   : > { %v983_v59 = vpop.permute.xlu1 %982 }
 0x1d9   : > { %v991_v8 = vpop.permute.xlu1 %990 }
 0x1dd   : > { %v999_v13 = vpop.permute.xlu1 %998  ;;  %v955_v62 = vpop.permute.xlu0 %954 }
 0x1e1   : > { %v979_v14 = vpop.permute.xlu1 %978  ;;  %v963_v38 = vpop.permute.xlu0 %962 }
 0x1e2   : > { %v1019_v49 = vsel %vm1005_vm0, %v921_v43, %v979_v14 }
 0x1e3   : > { %v1020_v63 = vsel %vm1007_vm1, %v1019_v49, %v983_v59 }
 0x1e5   : > { %v987_v2 = vpop.permute.xlu1 %986  ;;  %v971_v3 = vpop.permute.xlu0 %970 }
 0x1e6   : > { %v1021_v4 = vsel %vm1009_vm2, %v1020_v63, %v987_v2 }
 0x1e7   : > { %v1022_v10 = vsel %vm1011_vm3, %v1021_v4, %v991_v8 }
 0x1e9   : > { %v995_v5 = vpop.permute.xlu1 %994  ;;  %v951_v60 = vpop.permute.xlu0 %950 }
 0x1ea   : > { %v1023_v6 = vsel %vm1013_vm4, %v1022_v10, %v995_v5  ;;  %v1006_v55 = vsel %vm1005_vm0, %v853_v42, %v951_v60 }
 0x1eb   : > { %v1008_v19 = vsel %vm1007_vm1, %v1006_v55, %v955_v62  ;;  %v1024_v22 = vsel %vm1015_vm5, %v1023_v6, %v999_v13 }
 0x1ed   : > { %v1003_v18 = vpop.permute.xlu1 %1002  ;;  %v959_v21 = vpop.permute.xlu0 %958 }
 0x1ee   : > { %v1010_v26 = vsel %vm1009_vm2, %v1008_v19, %v959_v21  ;;  %v1025_v25 = vsel %vm1017_vm6, %v1024_v22, %v1003_v18 }
 0x1ef   : > { %1258 = vmatprep.subr.msk.mxu0 %vm1037_vm7, %v1025_v25  ;;  %v1012_v23 = vsel %vm1011_vm3, %v1010_v26, %v963_v38 }
 0x1f1   : > { %v967_v29 = vpop.permute.xlu0 %966 }
 0x1f2   : > { %v1014_v7 = vsel %vm1013_vm4, %v1012_v23, %v967_v29 }
 0x1f3   : > { %v1016_v28 = vsel %vm1015_vm5, %v1014_v7, %v971_v3 }
 0x1f5   : > { %v975_v20 = vpop.permute.xlu0 %974 }
 0x1f6   : > { %v1018_v24 = vsel %vm1017_vm6, %v1016_v28, %v975_v20 }
 0x1f7   : > { %1259 = vmatpush1.msk.msra.mxu0 %vm1037_vm7, %v1018_v24 }
 0x1f8   : > { %1260 = vmatmul.mubr.msk.f32.vlgmr.msra.gmra.mxu0 %vm1033_vm8, %v1026_v54 }
 0x1fa   : > { %v1031_v45 = vpop.permute.xlu1 %1030 }
 0x2b8   : > { %v1110_v52 = vpop.f32.mrf.mxu0 }
 0x2b9   : > { %v1111_v33 = vadd.f32 %v1110_v52, %v1031_v45 }
 0x2ba   : > { %v1112_v53 = vpop.f32.mrf.mxu0 }
 0x2bb   : > { %1115 = vst [vmem:[%s219_s12] sm:$0xff] %v1111_v33  ;;  %v1113_v32 = vadd.f32 %v1112_v53, %v1031_v45 }
 0x2bd   : > { %1116 = vst [vmem:[%s219_s12 + $0x8] sm:$0xff] %v1113_v32 }
 0x2be   : > { %1352 = shalt.err (!%p1349_p5)
}
 0x2bf   : > { %s1353_s5 = scalar_lea.hbm %s1132_s22, 256  ;;  %s1357_s8 = scalar_lea.hbm %s1962_s4, 512 }
 0x2c0   : > { %p1354_p6 = scmp.ne.s32.totalorder %s1132_s22, %s1353_s5  ;;  %p1358_p10 = scmp.lt.s32.totalorder %s1132_s22, %s1962_s4 }
 0x2c1   : > { %p1359_p11 = scmp.lt.s32.totalorder %s1357_s8, %s1353_s5 }
 0x2c2   : > { %p1355_p7 = pnand %p1354_p6, %p1496_p4 }
 0x2c3   : > { %p1360_p12 = por %p1359_p11, %p1358_p10 }
 0x2c4   : > { %p1356_p9 = pneg %p1355_p7 }
 0x2c6   : > { %p1361_p13 = pnand %p1360_p12, %p1356_p9 }
 0x2c8   : > { %1364 = shalt.err (!%p1361_p13)
}
 0x2c9   : > { %1269 = dma.vmem_to_hbm [thread:$0]  (%p1496_p4), %s1135_s13, 256, %s1132_s22, %s1118_s24  }
 0x2ca PF: > { %p1275_p0 = scmp.ge.s32.totalorder %s1415_s20, 2  ;;  %s1146_s11 = sand.u32 1, %s1395_s15  }
 0x2cb   : > { %s1147_s12 = scalar_lea.sflag [#allocation3], %s1146_s11 }
 0x2cc   : > { %p1272_p1 = pnand %p1275_p0, %p1503_p8 }
 0x2ce   : > { %p1273_p2 = pneg %p1272_p1 }
 0x2d0   : > { %1390 = dma.done.wait (%p1273_p2), %s1147_s12, 256  }
 0x2d1   : > { %1392 = vsyncadd (%p1273_p2), %s1147_s12, 4294967040  ;;  %s17_s20 = sadd.s32 1, %s1415_s20   ;;  %s1987_s15 = smov %s1399_s16 }
 0x2d2   : > { %p14_p3 = scmp.ge.s32.totalorder %s17_s20, 4   ;;  %s1988_s16 = smov %s1403_s17 }
 0x2d3   : > { %s1989_s17 = smov %s1509_s28  ;;  %s1990_s18 = smov %s1411_s19 }
 0x2d4   : > { %s1991_s19 = smov %s1993_s23  ;;  %16 = sbr.rel (!%p14_p3) target bundleno = 4 (0x4), region = 77 }
 0x2d9   :  { %1152 = vsyncpa [#allocation3], 1 }
 0x2da   :  { %1154 = vsyncpa [#allocation3 + $0x1], 1 }

</bundles_post_ra>
